<compile_context>
chip_gen: v5e
topology: v5e:2x2
jax: 0.10.0
libtpu: 0.0.40
codegen_flags: <defaults>
</compile_context>

<pallas_src>
import functools

import jax
import jax.numpy as jnp
from jax.experimental import pallas as pl
from jax.experimental.pallas import tpu as pltpu


# --------------------------------------------------------------------------- #
# Small helpers
# --------------------------------------------------------------------------- #
def _round_up(x, m):
    return (x + m - 1) // m * m


def _padded_block_bytes(shape, itemsize):
    """Conservative padded VMEM size of one block ((16,128) tiling of last 2 dims)."""
    dims = list(shape)
    dims[-1] = _round_up(dims[-1], 128)
    if len(dims) >= 2:
        dims[-2] = _round_up(dims[-2], 16)
    n = 1
    for d in dims:
        n *= d
    return n * itemsize


def _pick_images_per_block(n, hw, target_lanes=4096):
    """Largest divisor B of n with B*hw <= target_lanes, keeping >= 2 grid steps
    when n >= 2 (so both v7x TensorCores get work)."""
    best = 1
    for b in range(1, n + 1):
        if n % b:
            continue
        if b * hw > target_lanes:
            continue
        if n >= 2 and n // b < 2:
            continue
        best = b
    return best


# --------------------------------------------------------------------------- #
# Kernel
# --------------------------------------------------------------------------- #
def _make_kernel(cout, csq, k, off_w2, off_wh, images_per_block):
    """Returns the kernel; tiny structural constants are baked in as closure values."""

    def kernel(xc_ref, w5_ref, par_ref, *rest):
        # xc_ref : (1, 25*Cin+1, B*HW) bf16   im2col slab (+ ones row) for B images
        # w5_ref : (Cout, 25*Cin+1)  bf16     5x5 conv weight with baked bias column
        # par_ref: packed f32 slab holding w1,b1,w2,b2,wh,bh (static slices below)
        # pool_ref (B*HW, B) f32 / exp_ref (B, B*HW) f32 : only when B > 1
        if images_per_block > 1:
            pool_ref, exp_ref, out_ref = rest
        else:
            (out_ref,) = rest

        patches = xc_ref[0]                                   # (KC+1, B*HW) bf16

        # ---- 5x5 conv (+ baked bias): one wide MXU matmul, f32 accumulate ----
        y = jnp.dot(w5_ref[...], patches,
                    preferred_element_type=jnp.float32)       # (Cout, B*HW)
        y = jnp.maximum(y, 0.0)                               # ReLU (bias already in)

        # ---- SqueezeExcitation: per-image mean -> fc1 -> ReLU -> fc2 -> sigmoid
        if images_per_block > 1:
            # MXU block-averaging matmul; avoids any lane->sublane reshape.
            pooled = jnp.dot(y, pool_ref[...],
                             preferred_element_type=jnp.float32)   # (Cout, B)
        else:
            pooled = jnp.mean(y, axis=1, keepdims=True)            # (Cout, 1)

        # Packed-parameter static slices (zero-cost views of the resident slab).
        w1 = par_ref[0:csq, 0:cout]
        b1 = par_ref[0:csq, cout:cout + 1]
        w2 = par_ref[off_w2:off_w2 + cout, 0:csq]
        b2 = par_ref[off_w2:off_w2 + cout, csq:csq + 1]
        wh = par_ref[off_wh:off_wh + k, 0:cout]
        bh = par_ref[off_wh:off_wh + k, cout:cout + 1]

        s = jnp.maximum(jnp.dot(w1, pooled,
                                preferred_element_type=jnp.float32) + b1, 0.0)
        s = jax.nn.sigmoid(jnp.dot(w2, s,
                                   preferred_element_type=jnp.float32) + b2)  # (Cout, B)

        # ---- residual fused into one VPU pass: y * (1 + s_expanded) ----
        one_plus_s = 1.0 + s
        if images_per_block > 1:
            scale = jnp.dot(one_plus_s, exp_ref[...],
                            preferred_element_type=jnp.float32)   # (Cout, B*HW)
        else:
            scale = one_plus_s                                    # broadcasts over lanes
        y_b = (y * scale).astype(jnp.bfloat16)                    # single bf16 cast

        # ---- 1x1 head conv (bf16 operands, f32 accumulate) ----
        o = jnp.dot(wh.astype(jnp.bfloat16), y_b,
                    preferred_element_type=jnp.float32) + bh      # (K, B*HW)
        out_ref[...] = o[None].astype(out_ref.dtype)

    return kernel


# --------------------------------------------------------------------------- #
# Wrapper
# --------------------------------------------------------------------------- #
def _im2col_5x5_bias(x_nchw):
    """(N, Cin, H, W) f32 -> (N, 25*Cin + 1, H*W) bf16 (tap-major, Cin-minor,
    trailing ones row so the conv bias can be baked into the matmul)."""
    # TODO(synk): at large H*W, move the 5x5 gather in-kernel (DMA a padded
    # (Cin, H+4, W+4) block and build the taps with pltpu.roll) to avoid the
    # 25x im2col HBM amplification; at these sizes the bf16 wrapper im2col is fine.
    N, Cin, H, W = x_nchw.shape
    xb = x_nchw.astype(jnp.bfloat16)
    xp = jnp.pad(xb, ((0, 0), (0, 0), (2, 2), (2, 2)))
    taps = [xp[:, :, dy:dy + H, dx:dx + W] for dy in range(5) for dx in range(5)]
    cols = jnp.stack(taps, axis=1).reshape(N, 25 * Cin, H * W)
    ones = jnp.ones((N, 1, H * W), jnp.bfloat16)
    return jnp.concatenate([cols, ones], axis=1)


def _pack_params(w1, b1, w2, b2, wh, bh):
    """Pack the 6 tiny SE/head parameters into one f32 slab (8-row-aligned blocks)."""
    csq, cout = w1.shape
    k = wh.shape[0]
    off_w2 = _round_up(csq, 8)
    off_wh = off_w2 + _round_up(cout, 8)
    rows = off_wh + k
    cols = max(cout, csq) + 1
    p = jnp.zeros((rows, cols), jnp.float32)
    p = p.at[0:csq, 0:cout].set(w1)
    p = p.at[0:csq, cout].set(b1)
    p = p.at[off_w2:off_w2 + cout, 0:csq].set(w2)
    p = p.at[off_w2:off_w2 + cout, csq].set(b2)
    p = p.at[off_wh:off_wh + k, 0:cout].set(wh)
    p = p.at[off_wh:off_wh + k, cout].set(bh)
    return p, off_w2, off_wh


def atten_head_forward(x_nchw, params, images_per_block=None):
    """x_nchw: (N, Cin, H, W) float32.  Returns (N, K, H, W) like the PyTorch module."""
    w5, b5, w1, b1, w2, b2, wh, bh = params
    N, Cin, H, W = x_nchw.shape
    HW = H * W
    Cout = w5.shape[0]
    Csq = w1.shape[0]
    K = wh.shape[0]
    KC1 = 25 * Cin + 1

    B = images_per_block or _pick_images_per_block(N, HW)
    assert N % B == 0, (N, B)
    G = N // B
    BHW = B * HW

    # im2col (bf16) + block B images along the lane axis: (G, KC1, B*HW).
    x_col = _im2col_5x5_bias(x_nchw)
    xg = x_col.reshape(G, B, KC1, HW).transpose(0, 2, 1, 3).reshape(G, KC1, BHW)

    # Conv weight with baked bias column; head/SE params packed into one slab.
    w5b = jnp.concatenate([w5, b5[:, None]], axis=1).astype(jnp.bfloat16)  # (Cout, KC1)
    par, off_w2, off_wh = _pack_params(w1, b1, w2, b2, wh, bh)

    operands = [xg, w5b, par]
    in_specs = [
        pl.BlockSpec((1, KC1, BHW), lambda g: (g, 0, 0)),
        # Constant index maps: fetched once, resident across the whole grid.
        pl.BlockSpec((Cout, KC1), lambda g: (0, 0)),
        pl.BlockSpec(par.shape, lambda g: (0, 0)),
    ]
    blocks = [((1, KC1, BHW), 2), ((Cout, KC1), 2), (par.shape, 4), ((1, K, BHW), 4)]

    if B > 1:
        # Constant block-averaging / block-ones matrices for per-image SE on the MXU.
        img = jnp.arange(BHW, dtype=jnp.int32) // HW
        pool = (img[:, None] == jnp.arange(B)[None, :]).astype(jnp.float32) / HW
        expand = (jnp.arange(B)[:, None] == img[None, :]).astype(jnp.float32)
        operands += [pool, expand]
        in_specs += [pl.BlockSpec((BHW, B), lambda g: (0, 0)),
                     pl.BlockSpec((B, BHW), lambda g: (0, 0))]
        blocks += [((BHW, B), 4), ((B, BHW), 4)]

    # VMEM budget from the actual (padded, double-buffered) block footprint.
    footprint = sum(2 * _padded_block_bytes(s, i) for s, i in blocks)
    vmem_limit = min(64 << 20, max(8 << 20, 4 * footprint))

    kernel = _make_kernel(Cout, Csq, K, off_w2, off_wh, B)

    out = pl.pallas_call(
        kernel,
        out_shape=jax.ShapeDtypeStruct((G, K, BHW), jnp.float32),
        grid_spec=pltpu.PrefetchScalarGridSpec(
            num_scalar_prefetch=0,
            grid=(G,),
            in_specs=in_specs,
            out_specs=pl.BlockSpec((1, K, BHW), lambda g: (g, 0, 0)),
        ),
        compiler_params=pltpu.CompilerParams(
            dimension_semantics=("parallel",),   # >= 2 steps -> both v7x TCs busy
            vmem_limit_bytes=vmem_limit,
        ),
    )(*operands)

    # (G, K, B*HW) channel-major -> NCHW (for B == 1 the transpose is a no-op).
    return out.reshape(G, K, B, H, W).transpose(0, 2, 1, 3, 4).reshape(N, K, H, W)


# --------------------------------------------------------------------------- #
# Pure-JAX reference + init (mirrors init_weights: kaiming conv weights, zero biases)
# --------------------------------------------------------------------------- #
def atten_head_reference(x_nchw, params):
    w5, b5, w1, b1, w2, b2, wh, bh = params
    N, Cin, H, W = x_nchw.shape
    Cout = w5.shape[0]
    K = wh.shape[0]
    w_oihw = jnp.transpose(w5.reshape(Cout, 5, 5, Cin), (0, 3, 1, 2))
    y = jax.lax.conv_general_dilated(
        x_nchw, w_oihw, window_strides=(1, 1), padding=((2, 2), (2, 2)),
        dimension_numbers=("NCHW", "OIHW", "NCHW"))
    y = jnp.maximum(y + b5.reshape(1, Cout, 1, 1), 0.0)
    pooled = jnp.mean(y, axis=(2, 3))                          # (N, Cout)
    s = jnp.maximum(pooled @ w1.T + b1[None, :], 0.0)          # (N, Csq)
    s = jax.nn.sigmoid(s @ w2.T + b2[None, :])                 # (N, Cout)
    y = y + y * s[:, :, None, None]
    return jnp.einsum("nchw,kc->nkhw", y, wh) + bh.reshape(1, K, 1, 1)


def init_params(key, in_channels, out_channels, num_classes):
    csq = out_channels // 4
    k5, k1, k2, kh = jax.random.split(key, 4)

    def kaiming(k, shape, fan_in):
        return jax.random.normal(k, shape, jnp.float32) * jnp.sqrt(2.0 / fan_in)

    # 5x5 conv weight in matmul layout (tap-major, Cin-minor), matching im2col order.
    w5 = kaiming(k5, (out_channels, 25 * in_channels), 25 * in_channels)
    b5 = jnp.zeros((out_channels,), jnp.float32)
    w1 = kaiming(k1, (csq, out_channels), out_channels)         # SE fc1
    b1 = jnp.zeros((csq,), jnp.float32)
    w2 = kaiming(k2, (out_channels, csq), csq)                  # SE fc2
    b2 = jnp.zeros((out_channels,), jnp.float32)
    wh = kaiming(kh, (num_classes, out_channels), out_channels)  # head 1x1 conv
    bh = jnp.zeros((num_classes,), jnp.float32)
    return (w5, b5, w1, b1, w2, b2, wh, bh)


if __name__ == "__main__":
    CIN, COUT, NCLS, H, W = 4, 8, 3, 16, 16

    key = jax.random.PRNGKey(0)
    kx, kp = jax.random.split(key)
    params = init_params(kp, CIN, COUT, NCLS)

    fwd = jax.jit(functools.partial(atten_head_forward, params=params))

    # Exercise both paths: N=2 -> 1 image/step (grid=2), N=8 -> 4 images/step (grid=2).
    for N in (2, 8):
        x = jax.random.normal(jax.random.fold_in(kx, N), (N, CIN, H, W), jnp.float32)
        out = fwd(x)
        jax.block_until_ready(out)
        assert out.shape == (N, NCLS, H, W)
        assert bool(jnp.all(jnp.isfinite(out)))

        ref = atten_head_reference(x, params)
        max_abs = float(jnp.max(jnp.abs(ref)))
        max_err = float(jnp.max(jnp.abs(out - ref)))
        assert max_err <= 0.03 * max_abs + 1e-3, (N, max_err, max_abs)

    print("KERNEL_OK")
</pallas_src>

<mosaic_0001>
module attributes {stable_mosaic.version = 11 : i64} {
  func.func @kernel(%arg0: i32, %arg1: memref<1x101x256xbf16, #tpu.memory_space<vmem>>, %arg2: memref<8x101xbf16, #tpu.memory_space<vmem>>, %arg3: memref<19x9xf32, #tpu.memory_space<vmem>>, %arg4: memref<1x3x256xf32, #tpu.memory_space<vmem>>) attributes {dimension_semantics = [#tpu.dimension_semantics<parallel>], iteration_bounds = array<i64: 2>, scalar_prefetch = 0 : i64, scratch_operands = 0 : i64, tpu.core_type = #tpu.core_type<tc>, window_params = [{transform_indices = @transform_0, window_bounds = array<i64: 1, 101, 256>}, {pipeline_mode = #tpu.pipeline_mode<synchronous>, transform_indices = @transform_1, window_bounds = array<i64: 8, 101>}, {pipeline_mode = #tpu.pipeline_mode<synchronous>, transform_indices = @transform_2, window_bounds = array<i64: 19, 9>}, {transform_indices = @transform_3, window_bounds = array<i64: 1, 3, 256>}]} {
    %c0 = arith.constant 0 : index
    %c0_0 = arith.constant 0 : index
    %c0_1 = arith.constant 0 : index
    %0 = vector.load %arg1[%c0, %c0_0, %c0_1] : memref<1x101x256xbf16, #tpu.memory_space<vmem>>, vector<1x101x256xbf16>
    %1 = vector.shape_cast %0 : vector<1x101x256xbf16> to vector<101x256xbf16>
    %c0_2 = arith.constant 0 : index
    %c0_3 = arith.constant 0 : index
    %2 = vector.load %arg2[%c0_2, %c0_3] : memref<8x101xbf16, #tpu.memory_space<vmem>>, vector<8x101xbf16>
    %cst = arith.constant dense<0.000000e+00> : vector<8x256xf32>
    %3 = tpu.matmul %2, %1, %cst {dimension_numbers = #tpu.dot_dimension_numbers<[1], [0], [0], [1], [0, 0, 1, 1], [], []>} : vector<8x101xbf16>, vector<101x256xbf16>, vector<8x256xf32> -> vector<8x256xf32>
    %cst_4 = arith.constant 0.000000e+00 : f32
    %4 = vector.broadcast %cst_4 : f32 to vector<8x256xf32>
    %5 = arith.maximumf %3, %4 : vector<8x256xf32>
    %cst_5 = arith.constant dense<0.000000e+00> : vector<8xf32>
    %6 = vector.multi_reduction <add>, %5, %cst_5 [1] : vector<8x256xf32> to vector<8xf32>
    %7 = vector.shape_cast %6 : vector<8xf32> to vector<8x1xf32>
    %cst_6 = arith.constant 2.560000e+02 : f32
    %8 = vector.broadcast %cst_6 : f32 to vector<8x1xf32>
    %9 = arith.divf %7, %8 : vector<8x1xf32>
    %c0_7 = arith.constant 0 : index
    %c0_8 = arith.constant 0 : index
    %10 = vector.load %arg3[%c0_7, %c0_8] : memref<19x9xf32, #tpu.memory_space<vmem>>, vector<2x8xf32>
    %c0_9 = arith.constant 0 : index
    %c8 = arith.constant 8 : index
    %11 = vector.load %arg3[%c0_9, %c8] : memref<19x9xf32, #tpu.memory_space<vmem>>, vector<2x1xf32>
    %c8_10 = arith.constant 8 : index
    %c0_11 = arith.constant 0 : index
    %12 = vector.load %arg3[%c8_10, %c0_11] : memref<19x9xf32, #tpu.memory_space<vmem>>, vector<8x2xf32>
    %c8_12 = arith.constant 8 : index
    %c2 = arith.constant 2 : index
    %13 = vector.load %arg3[%c8_12, %c2] : memref<19x9xf32, #tpu.memory_space<vmem>>, vector<8x1xf32>
    %c16 = arith.constant 16 : index
    %c0_13 = arith.constant 0 : index
    %14 = vector.load %arg3[%c16, %c0_13] : memref<19x9xf32, #tpu.memory_space<vmem>>, vector<3x8xf32>
    %c16_14 = arith.constant 16 : index
    %c8_15 = arith.constant 8 : index
    %15 = vector.load %arg3[%c16_14, %c8_15] : memref<19x9xf32, #tpu.memory_space<vmem>>, vector<3x1xf32>
    %cst_16 = arith.constant dense<0.000000e+00> : vector<2x1xf32>
    %16 = tpu.matmul %10, %9, %cst_16 {dimension_numbers = #tpu.dot_dimension_numbers<[1], [0], [0], [1], [0, 0, 1, 1], [], []>} : vector<2x8xf32>, vector<8x1xf32>, vector<2x1xf32> -> vector<2x1xf32>
    %17 = arith.addf %16, %11 : vector<2x1xf32>
    %cst_17 = arith.constant 0.000000e+00 : f32
    %18 = vector.broadcast %cst_17 : f32 to vector<2x1xf32>
    %19 = arith.maximumf %17, %18 : vector<2x1xf32>
    %cst_18 = arith.constant dense<0.000000e+00> : vector<8x1xf32>
    %20 = tpu.matmul %12, %19, %cst_18 {dimension_numbers = #tpu.dot_dimension_numbers<[1], [0], [0], [1], [0, 0, 1, 1], [], []>} : vector<8x2xf32>, vector<2x1xf32>, vector<8x1xf32> -> vector<8x1xf32>
    %21 = arith.addf %20, %13 : vector<8x1xf32>
    %22 = arith.negf %21 : vector<8x1xf32>
    %23 = math.exp %22 : vector<8x1xf32>
    %cst_19 = arith.constant 1.000000e+00 : f32
    %24 = vector.broadcast %cst_19 : f32 to vector<8x1xf32>
    %25 = arith.addf %24, %23 : vector<8x1xf32>
    %26 = arith.divf %24, %25 : vector<8x1xf32>
    %cst_20 = arith.constant 1.000000e+00 : f32
    %27 = vector.broadcast %cst_20 : f32 to vector<8x1xf32>
    %28 = arith.addf %27, %26 : vector<8x1xf32>
    %29 = vector.broadcast %28 : vector<8x1xf32> to vector<8x256xf32>
    %30 = arith.mulf %5, %29 : vector<8x256xf32>
    %31 = arith.truncf %30 : vector<8x256xf32> to vector<8x256xbf16>
    %32 = arith.truncf %14 : vector<3x8xf32> to vector<3x8xbf16>
    %cst_21 = arith.constant dense<0.000000e+00> : vector<3x256xf32>
    %33 = tpu.matmul %32, %31, %cst_21 {dimension_numbers = #tpu.dot_dimension_numbers<[1], [0], [0], [1], [0, 0, 1, 1], [], []>} : vector<3x8xbf16>, vector<8x256xbf16>, vector<3x256xf32> -> vector<3x256xf32>
    %34 = vector.broadcast %15 : vector<3x1xf32> to vector<3x256xf32>
    %35 = arith.addf %33, %34 : vector<3x256xf32>
    %36 = vector.shape_cast %35 : vector<3x256xf32> to vector<1x3x256xf32>
    %c0_22 = arith.constant 0 : index
    %c0_23 = arith.constant 0 : index
    %c0_24 = arith.constant 0 : index
    %37 = vector.load %arg4[%c0_22, %c0_23, %c0_24] : memref<1x3x256xf32, #tpu.memory_space<vmem>>, vector<1x3x256xf32>
    tpu.vector_store %arg4[%c0_22, %c0_23, %c0_24], %36 {strides = array<i32>} : memref<1x3x256xf32, #tpu.memory_space<vmem>>, vector<1x3x256xf32>,
    return
  }
  func.func @transform_0(%arg0: i32) -> (i32, i32, i32) {
    %c0_i32 = arith.constant 0 : i32
    %c0_i32_0 = arith.constant 0 : i32
    %c0_i32_1 = arith.constant 0 : i32
    return %arg0, %c0_i32, %c0_i32_0 : i32, i32, i32
  }
  func.func @transform_1(%arg0: i32) -> (i32, i32) {
    %c0_i32 = arith.constant 0 : i32
    %c0_i32_0 = arith.constant 0 : i32
    %c0_i32_1 = arith.constant 0 : i32
    return %c0_i32, %c0_i32_0 : i32, i32
  }
  func.func @transform_2(%arg0: i32) -> (i32, i32) {
    %c0_i32 = arith.constant 0 : i32
    %c0_i32_0 = arith.constant 0 : i32
    %c0_i32_1 = arith.constant 0 : i32
    return %c0_i32, %c0_i32_0 : i32, i32
  }
  func.func @transform_3(%arg0: i32) -> (i32, i32, i32) {
    %c0_i32 = arith.constant 0 : i32
    %c0_i32_0 = arith.constant 0 : i32
    %c0_i32_1 = arith.constant 0 : i32
    return %arg0, %c0_i32, %c0_i32_0 : i32, i32, i32
  }
}

</mosaic_0001>

<bundles_post_ra>
// kernel: atten_head_forward.1
= control target key start
LH: loop header
LB: loop body
LE: loop exit
PB: predicated region body
PF: predicated region fallthrough
CT: control target
= control target key end

     0   :  { %s634_s12 = smov 0   ;;  %s716_s0 = inlined_call_operand.vmem [shape: bf16[2,101,256], index: 0, kind: input, shape index: {}]   ;;  %s717_s1 = inlined_call_operand.vmem [shape: bf16[8,101], index: 1, kind: input, shape index: {}]   ;;  %s718_s2 = inlined_call_operand.vmem [shape: f32[19,9], index: 2, kind: input, shape index: {}]   ;;  %s719_s3 = inlined_call_operand.vmem [shape: f32[2,3,256], index: 3, kind: output, shape index: {}]  }
   0x1 LB: > { %s497_s13 = sadd.s32 4294967295, %s606_s12   ;;  %p501_p0 = scmp.ge.s32.totalorder %s606_s12, 1  ;;  %s606_s12 = sphi %s634_s12, %s13_s12  }
   0x2   : > { %p137_p1 = scmp.lt.s32.totalorder %s606_s12, 3 }
   0x4   : > { %p138_p2 = pnand %p501_p0, %p137_p1 }
   0x5   : > { %p161_p3 = scmp.lt.s32.totalorder (!%p138_p2), %s497_s13, 1  ;;  %s609_s22 = smov (!%p138_p2), 120  }
   0x6   : > { %141 = sbr.rel (%p138_p2) target bundleno = 862 (0x35e), region = 32  ;;  %s611_s25 = smov (!%p138_p2), 126  }
   0xb   : > { %s721_s13 = smov (!%p161_p3, %s497_s13), 1  ;;  %vm255_vm0 = vcmask 1041408   ;;  %vm256_vm1 = vcmask 1042432   ;;  %v608_v0 = vmov 65535   ;;  %v185_v46 = vld [vmem:[%s717_s1] sm:$0xf] }
   0xc   : > { %s576_s14 = smul.u32 104, %s721_s13  ;;  %v257_v1 = vsel %vm255_vm0, 4294967295, %v608_v0  ;;  %vm251_vm2 = vcmask 826368   ;;  %v304_v54 = vld [vmem:[%s718_s2] sm:$0x3]  ;;  %v610_v55 = vmov 256.0  }
   0xd   : > { %v258_v5 = vsel %vm256_vm1, %v257_v1, 0  ;;  %594 = vrcp.f32 %v610_v55  ;;  %vm311_vm4 = vcmask 64512   ;;  %v305_v0 = vld [vmem:[%s718_s2 + $0x8] sm:$0xff]  ;;  %vm339_vm5 = vcmask 15360   ;;  %s563_s28 = sshll.u32 %s721_s13, 3 }
   0xe   : > { %s648_s17 = scalar_lea.vmem %s716_s0, %s576_s14  ;;  %336 = vrot.lane.b32.xlu1 %v305_v0, %s611_s25  ;;  %vm403_vm10 = vcmask 1043456   ;;  %s170_s4 = scalar_lea.vmem %s719_s3, %s563_s28 }
   0xf   : > { %v184_v2 = vld [vmem:[%s648_s17 + $0x60] sm:$0x77]  ;;  %v547_v8 = vld [vmem:[%s648_s17 + $0x50] sm:$0xf]  ;;  %v575_v9 = vld [vmem:[%s648_s17 + $0x54] sm:$0xf0] }
  0x10   : > { %v223_v3 = vunpack.c.l.b16 %v184_v2  ;;  %v224_v4 = vunpack.c.h.b16 %v184_v2  ;;  %v574_v10 = vld [vmem:[%s648_s17 + $0x54] sm:$0xf]  ;;  %v549_v11 = vld [vmem:[%s648_s17 + $0x58] sm:$0xf0]  ;;  %v548_v14 = vor.u32 %v575_v9, %v547_v8  ;;  %v539_v16 = vld [vmem:[%s648_s17 + $0x40] sm:$0xf] }
  0x11   : > { %v552_v15 = vor.u32 %v574_v10, %v549_v11  ;;  %v573_v17 = vld [vmem:[%s648_s17 + $0x44] sm:$0xf0]  ;;  %v572_v18 = vld [vmem:[%s648_s17 + $0x44] sm:$0xf]  ;;  %v541_v19 = vld [vmem:[%s648_s17 + $0x48] sm:$0xf0] }
  0x12   : > { %v237_v6 = vpack.c.b16 %v223_v3, %v223_v3  ;;  %v238_v7 = vpack.c.b16 %v224_v4, %v224_v4  ;;  %v540_v20 = vor.u32 %v573_v17, %v539_v16  ;;  %v544_v21 = vor.u32 %v572_v18, %v541_v19  ;;  %v531_v22 = vld [vmem:[%s648_s17 + $0x30] sm:$0xf]  ;;  %v571_v23 = vld [vmem:[%s648_s17 + $0x34] sm:$0xf0]  ;;  %v570_v24 = vld [vmem:[%s648_s17 + $0x34] sm:$0xf] }
  0x13   : > { %v533_v25 = vld [vmem:[%s648_s17 + $0x38] sm:$0xf0]  ;;  %v532_v26 = vor.u32 %v571_v23, %v531_v22  ;;  %v523_v28 = vld [vmem:[%s648_s17 + $0x20] sm:$0xf]  ;;  %v569_v29 = vld [vmem:[%s648_s17 + $0x24] sm:$0xf0]  ;;  %v595_v56 = vpop.eup %594 }
  0x14   : > { %v260_v12 = vand.u32 %v258_v5, %v237_v6  ;;  %v263_v13 = vand.u32 %v258_v5, %v238_v7  ;;  %v536_v27 = vor.u32 %v570_v24, %v533_v25  ;;  %v568_v30 = vld [vmem:[%s648_s17 + $0x24] sm:$0xf]  ;;  %v525_v31 = vld [vmem:[%s648_s17 + $0x28] sm:$0xf0]  ;;  %v524_v32 = vor.u32 %v569_v29, %v523_v28  ;;  %v515_v34 = vld [vmem:[%s648_s17 + $0x10] sm:$0xf] }
  0x15   : > { %v528_v33 = vor.u32 %v568_v30, %v525_v31  ;;  %v567_v35 = vld [vmem:[%s648_s17 + $0x14] sm:$0xf0]  ;;  %v566_v36 = vld [vmem:[%s648_s17 + $0x14] sm:$0xf]  ;;  %v517_v37 = vld [vmem:[%s648_s17 + $0x18] sm:$0xf0]  ;;  %vm301_vm3 = vweird.f32 %v595_v56 }
  0x16   : > { %266 = vmatpush.bf16.msra.mxu0 %v260_v12  ;;  %279 = vmatpush.bf16.msra.mxu1 %v263_v13  ;;  %v516_v38 = vor.u32 %v567_v35, %v515_v34  ;;  %v520_v39 = vor.u32 %v566_v36, %v517_v37  ;;  %v507_v40 = vld [vmem:[%s648_s17] sm:$0xf]  ;;  %v565_v41 = vld [vmem:[%s648_s17 + $0x4] sm:$0xf0]  ;;  %v564_v42 = vld [vmem:[%s648_s17 + $0x4] sm:$0xf] }
  0x17   : > { %v509_v43 = vld [vmem:[%s648_s17 + $0x8] sm:$0xf0]  ;;  %v508_v44 = vor.u32 %v565_v41, %v507_v40  ;;  %v297_v57 = vmul.f32 256.0, %v595_v56  ;;  %v612_v5 = vmov 0   ;;  %v306_v23 = vld [vmem:[%s718_s2 + $0x10] sm:$0x7] }
  0x18   : > { %v512_v45 = vor.u32 %v564_v42, %v509_v43  ;;  %591 = vset.pattern.permute.xlu1 %v612_v5  ;;  %v613_v24 = vmov 8  }
  0x19   : > { %v298_v58 = vsub.f32 1.0, %v297_v57  ;;  %592 = vset.pattern.permute.xlu2 %v613_v24  ;;  %593 = vset.pattern.permute.xlu0 %v613_v24 }
  0x1a   : > { %267 = vmatpush.bf16.msra.mxu0 %v548_v14  ;;  %280 = vmatpush.bf16.msra.mxu1 %v552_v15 }
  0x1b   : > { %v299_v59 = vmul.f32 %v595_v56, %v298_v58  ;;  %397 = vperm.xlu2 %592, %v306_v23  }
  0x1d   : > { %v300_v60 = vadd.f32 %v595_v56, %v299_v59 }
  0x1e   : > { %268 = vmatpush.bf16.msra.mxu0 %v540_v20  ;;  %281 = vmatpush.bf16.msra.mxu1 %v544_v21 }
  0x1f   : > { %v302_v61 = vsel %vm301_vm3, %v595_v56, %v300_v60 }
  0x22   : > { %269 = vmatpush.bf16.msra.mxu0 %v532_v26  ;;  %282 = vmatpush.bf16.msra.mxu1 %v536_v27 }
  0x26   : > { %270 = vmatpush.bf16.msra.mxu0 %v524_v32  ;;  %283 = vmatpush.bf16.msra.mxu1 %v528_v33  ;;  %v394_v32 = vpack.c.bf16 %v306_v23, %v306_v23 }
  0x2a   : > { %271 = vmatpush.bf16.msra.mxu0 %v516_v38  ;;  %284 = vmatpush.bf16.msra.mxu1 %v520_v39 }
  0x2e   : > { %272 = vmatpush.bf16.msra.mxu0 %v508_v44  ;;  %285 = vmatpush.bf16.msra.mxu1 %v512_v45 }
  0x31   : > { %553 = vmatmul.msk.bf16.vlgmr.msra.gmra.mxu0 %vm251_vm2, %v185_v46  ;;  %554 = vmatmul.msk.bf16.vlgmr.msra.gmra.mxu1 %vm251_vm2, %v185_v46 }
  0x75   : > { %v398_v33 = vpop.permute.xlu2 %397 }
  0x80   : > { %v337_v6 = vpop.permute.xlu1 %336 }
  0xae   : > { %v679_v47 = vpop.f32.mrf.mxu0  ;;  %v681_v48 = vpop.f32.mrf.mxu1 }
  0xaf   : > { %v291_v49 = vmax.f32 %v679_v47, 0.0  ;;  %v292_v50 = vmax.f32 %v681_v48, 0.0 }
  0xb1   : > { %v293_v51 = vadd.f32 %v292_v50, %v291_v49 }
  0xb3   : > { %294 = vadd.xlane.f32.xlu0 %v293_v51 }
  0xb6   : > { %v276_v52 = vpop.f32.mrf.mxu0  ;;  %v289_v53 = vpop.f32.mrf.mxu1 }
  0xc7   : > { %308 = vrot.lane.b32.xlu0 %v304_v54, %s609_s22 }
 0x126   : > { %v295_v62 = vpop.xlane.xlu0 %294 }
 0x127   : > { %v303_v63 = vmul.f32 %v302_v61, %v295_v62 }
 0x129   : > { %329 = vmatpush.msra.mxu2 %v303_v63 }
 0x12a   : > { %555 = vmatmul.msk.f32.vlgmr.msra.gmra.mxu2 %vm311_vm4, %v304_v54 }
 0x139   : > { %v309_v1 = vpop.permute.xlu0 %308 }
 0x1ad   : > { %v331_v2 = vpop.f32.mrf.mxu2 }
 0x1ae   : > { %v332_v3 = vadd.f32 %v331_v2, %v309_v1 }
 0x1b0   : > { %v334_v4 = vmax.f32 %v332_v3, 0.0 }
 0x1b2   : > { %556 = vmatpush.msk.msra.mxu3 %vm255_vm0, %v334_v4 }
 0x1b3   : > { %557 = vmatmul.msk.f32.vlgmr.msra.gmra.mxu3 %vm339_vm5, %v305_v0 }
 0x236   : > { %v362_v7 = vpop.f32.mrf.mxu3 }
 0x237   : > { %v363_v8 = vadd.f32 %v362_v7, %v337_v6 }
 0x239   : > { %v558_v9 = vmul.f32 -1.442695, %v363_v8 }
 0x23b   : > { %596 = vpow2.f32 %v558_v9 }
 0x241   : > { %v597_v10 = vpop.eup %596 }
 0x242   : > { %v368_v11 = vadd.f32 1.0, %v597_v10 }
 0x244   : > { %598 = vrcp.f32 %v368_v11  ;;  %v380_v15 = vand.u32 2147483648, %v368_v11  ;;  %v378_v17 = vand.u32 2147483647, %v368_v11  ;;  %vm374_vm7 = vweird.f32 %v368_v11 }
 0x246   : > { %v381_v19 = vor.u32 1.1754944e-38, %v380_v15  ;;  %vm379_vm9 = vcmp.eq.f32.partialorder %v378_v17, 8.507059e+37 }
 0x24a   : > { %v599_v12 = vpop.eup %598 }
 0x24b   : > { %v370_v13 = vmul.f32 %v599_v12, %v368_v11  ;;  %vm375_vm6 = vweird.f32 %v599_v12 }
 0x24c   : > { %vm376_vm8 = vmor %vm374_vm7, %vm375_vm6 }
 0x24d   : > { %v371_v14 = vsub.f32 1.0, %v370_v13 }
 0x24f   : > { %v372_v16 = vmul.f32 %v599_v12, %v371_v14 }
 0x251   : > { %v373_v18 = vadd.f32 %v599_v12, %v372_v16 }
 0x253   : > { %v377_v20 = vsel %vm376_vm8, %v599_v12, %v373_v18 }
 0x254   : > { %v382_v21 = vsel %vm379_vm9, %v381_v19, %v377_v20 }
 0x255   : > { %v384_v22 = vadd.f32 1.0, %v382_v21 }
 0x257   : > { %387 = vperm.xlu1 %591, %v384_v22  }
 0x2c9   : > { %v388_v25 = vpop.permute.xlu1 %387 }
 0x2ca   : > { %v390_v26 = vmul.f32 %v388_v25, %v291_v49  ;;  %v391_v27 = vmul.f32 %v388_v25, %v292_v50 }
 0x2cc   : > { %v392_v28 = vpack.c.bf16 %v390_v26, %v390_v26  ;;  %v393_v29 = vpack.c.bf16 %v391_v27, %v391_v27 }
 0x2ce   : > { %v405_v30 = vsel %vm403_vm10, %v392_v28, 0  ;;  %v408_v31 = vsel %vm403_vm10, %v393_v29, 0 }
 0x2cf   : > { %417 = vmatpush.bf16.msrb.mxu2 %v405_v30  ;;  %430 = vmatpush.bf16.msrb.mxu3 %v408_v31 }
 0x2d2   : > { %559 = vmatmul.msk.bf16.vlgmr.msrb.gmra.mxu2 %vm311_vm4, %v394_v32  ;;  %560 = vmatmul.msk.bf16.vlgmr.msrb.gmra.mxu3 %vm311_vm4, %v394_v32 }
 0x355   : > { %v419_v34 = vpop.f32.mrf.mxu2  ;;  %v432_v35 = vpop.f32.mrf.mxu3 }
 0x356   : > { %v433_v36 = vadd.f32 %v432_v35, %v398_v33  ;;  %v420_v37 = vadd.f32 %v419_v34, %v398_v33 }
 0x358   : > { %v438_v38 = vrot.slane %v433_v36, 4 }
 0x35a   : > { %v439_v39 = vsel %vm403_vm10, %v420_v37, %v438_v38 }
 0x35b   : > { %441 = vst [vmem:[%s170_s4] sm:$0x77] %v439_v39 }
 0x35d   : > { %v421_v40 = vpop.f32.mrf.mxu2  ;;  %v434_v41 = vpop.f32.mrf.mxu3 }
 0x35e PF: > { %s13_s12 = sadd.s32 1, %s606_s12  }
 0x35f   : > { %p10_p4 = scmp.ge.s32.totalorder %s13_s12, 4  }
 0x361   :  { %12 = sbr.rel (!%p10_p4) target bundleno = 1 (0x1), region = 62 }

</bundles_post_ra>
